<compile_context>
chip_gen: v6e
topology: v6e:2x2x1
jax: 0.10.0
libtpu: 0.0.40
codegen_flags: <defaults>
</compile_context>

<pallas_src>
import functools

import jax
import jax.numpy as jnp
from jax.experimental import pallas as pl
from jax.experimental.pallas import tpu as pltpu

HIDDEN = 128
LANE = 128


def _pick_tile(n, candidates):
    for t in candidates:
        if n % t == 0:
            return t
    return n  # fall back to an untiled axis (fine for small graphs)


def _cheb_layer_kernel(adj_ref, dinv_k_ref, dinv_i_ref, hk_ref, hi_ref,
                       w0_ref, w1_ref, b_ref, out_ref, acc_ref,
                       *, activation, valid_out):
    k = pl.program_id(1)

    @pl.when(k == 0)
    def _init():
        acc_ref[...] = jnp.zeros_like(acc_ref)

    # Accumulate adj[i_blk, k_blk] @ (dinv[k_blk] * h[k_blk])  (bf16 MXU, f32 acc)
    hk = (dinv_k_ref[...] * hk_ref[...]).astype(jnp.bfloat16)
    acc_ref[...] += jnp.dot(adj_ref[...], hk, preferred_element_type=jnp.float32)

    @pl.when(k == pl.num_programs(1) - 1)
    def _finalize():
        # T1 row-block of L_hat @ h: apply the row-side (-dinv) scaling.
        t1 = (-dinv_i_ref[...]) * acc_ref[...]
        hi = hi_ref[...].astype(jnp.bfloat16)
        out = (jnp.dot(hi, w0_ref[...], preferred_element_type=jnp.float32)
               + jnp.dot(t1.astype(jnp.bfloat16), w1_ref[...],
                         preferred_element_type=jnp.float32)
               + b_ref[...])
        if activation == "relu":
            out = jnp.maximum(out, 0.0)
        elif activation == "log_softmax":
            if valid_out < out.shape[-1]:
                cols = jax.lax.broadcasted_iota(jnp.int32, out.shape, 1)
                out = jnp.where(cols < valid_out, out, -1e30)
            m = jnp.max(out, axis=-1, keepdims=True)
            z = out - m
            lse = jnp.log(jnp.sum(jnp.exp(z), axis=-1, keepdims=True))
            out = z - lse
        out_ref[...] = out.astype(out_ref.dtype)


def _cheb_layer(h, adj_bf16, dinv_col, w0, w1, b, *, activation, valid_out,
                tm, tk):
    n, c_in = h.shape
    c_out = w0.shape[1]
    grid = (n // tm, n // tk)

    kernel = functools.partial(_cheb_layer_kernel, activation=activation,
                               valid_out=valid_out)

    return pl.pallas_call(
        kernel,
        out_shape=jax.ShapeDtypeStruct((n, c_out), jnp.float32),
        grid_spec=pltpu.PrefetchScalarGridSpec(
            num_scalar_prefetch=0,
            grid=grid,
            in_specs=[
                pl.BlockSpec((tm, tk), lambda i, k: (i, k)),        # adj tile
                pl.BlockSpec((tk, 1), lambda i, k: (k, 0)),         # dinv (cols)
                pl.BlockSpec((tm, 1), lambda i, k: (i, 0)),         # dinv (rows)
                pl.BlockSpec((tk, c_in), lambda i, k: (k, 0)),      # h k-block
                pl.BlockSpec((tm, c_in), lambda i, k: (i, 0)),      # h i-block
                pl.BlockSpec((c_in, c_out), lambda i, k: (0, 0)),   # W0 (resident)
                pl.BlockSpec((c_in, c_out), lambda i, k: (0, 0)),   # W1 (resident)
                pl.BlockSpec((1, c_out), lambda i, k: (0, 0)),      # bias (resident)
            ],
            out_specs=pl.BlockSpec((tm, c_out), lambda i, k: (i, 0)),
            scratch_shapes=[pltpu.VMEM((tm, c_in), jnp.float32)],
        ),
        compiler_params=pltpu.CompilerParams(
            dimension_semantics=("parallel", "arbitrary"),
            vmem_limit_bytes=48 * 1024 * 1024,
        ),
    )(adj_bf16, dinv_col, dinv_col, h, h, w0, w1, b)


def cheb_c_forward(features, adj, params):
    """features: [N, C_in] f32; adj: [N, N] f32 dense adjacency (no self-loops)."""
    n = features.shape[0]
    out_dim = params["w30"].shape[1]
    c_pad = ((out_dim + LANE - 1) // LANE) * LANE

    # Degree / D^{-1/2}; the normalized Laplacian itself is fused into the kernel.
    deg = jnp.sum(adj, axis=1)
    dinv = jnp.where(deg > 0, 1.0 / jnp.sqrt(deg), 0.0)
    dinv_col = dinv.reshape(n, 1).astype(jnp.float32)

    adj_bf16 = adj.astype(jnp.bfloat16)  # 0/1 entries -> exact in bf16

    def bf16(w):
        return w.astype(jnp.bfloat16)

    # Pad the classifier weights/bias to a lane-dense 128-wide output.
    w30 = jnp.pad(params["w30"], ((0, 0), (0, c_pad - out_dim)))
    w31 = jnp.pad(params["w31"], ((0, 0), (0, c_pad - out_dim)))
    b3 = jnp.pad(params["b3"], ((0, 0), (0, c_pad - out_dim)))

    tm = _pick_tile(n, (512, 256, 128))
    tk = _pick_tile(n, (2048, 1024, 512, 256, 128))

    h = _cheb_layer(features, adj_bf16, dinv_col,
                    bf16(params["w10"]), bf16(params["w11"]), params["b1"],
                    activation="relu", valid_out=HIDDEN, tm=tm, tk=tk)
    h = _cheb_layer(h, adj_bf16, dinv_col,
                    bf16(params["w20"]), bf16(params["w21"]), params["b2"],
                    activation="relu", valid_out=HIDDEN, tm=tm, tk=tk)
    out = _cheb_layer(h, adj_bf16, dinv_col,
                      bf16(w30), bf16(w31), b3,
                      activation="log_softmax", valid_out=out_dim, tm=tm, tk=tk)
    return out[:, :out_dim]


def init_params(key, input_dim, output_dim):
    ks = jax.random.split(key, 6)

    def glorot(k, fan_in, fan_out):
        lim = jnp.sqrt(6.0 / (fan_in + fan_out))
        return jax.random.uniform(k, (fan_in, fan_out), jnp.float32, -lim, lim)

    return {
        "w10": glorot(ks[0], input_dim, HIDDEN),
        "w11": glorot(ks[1], input_dim, HIDDEN),
        "b1": jnp.zeros((1, HIDDEN), jnp.float32),
        "w20": glorot(ks[2], HIDDEN, HIDDEN),
        "w21": glorot(ks[3], HIDDEN, HIDDEN),
        "b2": jnp.zeros((1, HIDDEN), jnp.float32),
        "w30": glorot(ks[4], HIDDEN, output_dim),
        "w31": glorot(ks[5], HIDDEN, output_dim),
        "b3": jnp.zeros((1, output_dim), jnp.float32),
    }


def _reference(features, adj, params):
    deg = jnp.sum(adj, axis=1)
    dinv = jnp.where(deg > 0, 1.0 / jnp.sqrt(deg), 0.0)
    l_hat = -(dinv[:, None] * adj * dinv[None, :])

    def cheb(h, w0, w1, b):
        return h @ w0 + (l_hat @ h) @ w1 + b

    h = jax.nn.relu(cheb(features, params["w10"], params["w11"], params["b1"]))
    h = jax.nn.relu(cheb(h, params["w20"], params["w21"], params["b2"]))
    h = cheb(h, params["w30"], params["w31"], params["b3"])
    return jax.nn.log_softmax(h, axis=1)


if __name__ == "__main__":
    N, INPUT_DIM, OUTPUT_DIM = 16, 32, 8

    key = jax.random.PRNGKey(0)
    k_feat, k_adj, k_param = jax.random.split(key, 3)

    features = jax.random.normal(k_feat, (N, INPUT_DIM), jnp.float32)
    # symmetric 0/1 adjacency without self-loops
    rnd = jax.random.uniform(k_adj, (N, N))
    adj = (rnd + rnd.T > 1.0).astype(jnp.float32)
    adj = adj * (1.0 - jnp.eye(N, dtype=jnp.float32))

    params = init_params(k_param, INPUT_DIM, OUTPUT_DIM)

    out = cheb_c_forward(features, adj, params)
    out = jax.block_until_ready(out)

    ref = _reference(features, adj, params)
    assert out.shape == (N, OUTPUT_DIM)
    # bf16 MXU feeds (f32 accumulation) -> slightly looser tolerance than pure f32.
    assert jnp.allclose(out, ref, atol=5e-2, rtol=5e-2)

    print("KERNEL_OK")
</pallas_src>

<mosaic_0001>
module attributes {stable_mosaic.version = 11 : i64} {
  func.func @_cheb_layer_kernel(%arg0: i32, %arg1: i32, %arg2: memref<16x16xbf16, #tpu.memory_space<vmem>>, %arg3: memref<16x1xf32, #tpu.memory_space<vmem>>, %arg4: memref<16x1xf32, #tpu.memory_space<vmem>>, %arg5: memref<16x32xf32, #tpu.memory_space<vmem>>, %arg6: memref<16x32xf32, #tpu.memory_space<vmem>>, %arg7: memref<32x128xbf16, #tpu.memory_space<vmem>>, %arg8: memref<32x128xbf16, #tpu.memory_space<vmem>>, %arg9: memref<1x128xf32, #tpu.memory_space<vmem>>, %arg10: memref<16x128xf32, #tpu.memory_space<vmem>>, %arg11: memref<16x32xf32, #tpu.memory_space<vmem>>) attributes {dimension_semantics = [#tpu.dimension_semantics<parallel>, #tpu.dimension_semantics<arbitrary>], iteration_bounds = array<i64: 1, 1>, scalar_prefetch = 0 : i64, scratch_operands = 1 : i64, tpu.core_type = #tpu.core_type<tc>, window_params = [{transform_indices = @transform_0, window_bounds = array<i64: 16, 16>}, {transform_indices = @transform_1, window_bounds = array<i64: 16, 1>}, {transform_indices = @transform_2, window_bounds = array<i64: 16, 1>}, {transform_indices = @transform_3, window_bounds = array<i64: 16, 32>}, {transform_indices = @transform_4, window_bounds = array<i64: 16, 32>}, {pipeline_mode = #tpu.pipeline_mode<synchronous>, transform_indices = @transform_5, window_bounds = array<i64: 32, 128>}, {pipeline_mode = #tpu.pipeline_mode<synchronous>, transform_indices = @transform_6, window_bounds = array<i64: 32, 128>}, {pipeline_mode = #tpu.pipeline_mode<synchronous>, transform_indices = @transform_7, window_bounds = array<i64: 1, 128>}, {transform_indices = @transform_8, window_bounds = array<i64: 16, 128>}]} {
    %c0_i32 = arith.constant 0 : i32
    %0 = arith.cmpi eq, %arg1, %c0_i32 : i32
    %1 = arith.extui %0 : i1 to i32
    %c0_i32_0 = arith.constant 0 : i32
    %2 = arith.cmpi ne, %1, %c0_i32_0 : i32
    scf.if %2 {
      %cst_12 = arith.constant 0.000000e+00 : f32
      %16 = vector.broadcast %cst_12 : f32 to vector<16x32xf32>
      %c0_13 = arith.constant 0 : index
      %c0_14 = arith.constant 0 : index
      %17 = vector.load %arg11[%c0_13, %c0_14] : memref<16x32xf32, #tpu.memory_space<vmem>>, vector<16x32xf32>
      tpu.vector_store %arg11[%c0_13, %c0_14], %16 {strides = array<i32>} : memref<16x32xf32, #tpu.memory_space<vmem>>, vector<16x32xf32>,
    } else {
    }
    %c0 = arith.constant 0 : index
    %c0_1 = arith.constant 0 : index
    %3 = vector.load %arg3[%c0, %c0_1] : memref<16x1xf32, #tpu.memory_space<vmem>>, vector<16x1xf32>
    %c0_2 = arith.constant 0 : index
    %c0_3 = arith.constant 0 : index
    %4 = vector.load %arg5[%c0_2, %c0_3] : memref<16x32xf32, #tpu.memory_space<vmem>>, vector<16x32xf32>
    %5 = vector.broadcast %3 : vector<16x1xf32> to vector<16x32xf32>
    %6 = arith.mulf %5, %4 : vector<16x32xf32>
    %7 = arith.truncf %6 : vector<16x32xf32> to vector<16x32xbf16>
    %c0_4 = arith.constant 0 : index
    %c0_5 = arith.constant 0 : index
    %8 = vector.load %arg11[%c0_4, %c0_5] : memref<16x32xf32, #tpu.memory_space<vmem>>, vector<16x32xf32>
    %c0_6 = arith.constant 0 : index
    %c0_7 = arith.constant 0 : index
    %9 = vector.load %arg2[%c0_6, %c0_7] : memref<16x16xbf16, #tpu.memory_space<vmem>>, vector<16x16xbf16>
    %cst = arith.constant dense<0.000000e+00> : vector<16x32xf32>
    %10 = tpu.matmul %9, %7, %cst {dimension_numbers = #tpu.dot_dimension_numbers<[1], [0], [0], [1], [0, 0, 1, 1], [], []>} : vector<16x16xbf16>, vector<16x32xbf16>, vector<16x32xf32> -> vector<16x32xf32>
    %11 = arith.addf %8, %10 : vector<16x32xf32>
    %c0_8 = arith.constant 0 : index
    %c0_9 = arith.constant 0 : index
    %12 = vector.load %arg11[%c0_8, %c0_9] : memref<16x32xf32, #tpu.memory_space<vmem>>, vector<16x32xf32>
    tpu.vector_store %arg11[%c0_8, %c0_9], %11 {strides = array<i32>} : memref<16x32xf32, #tpu.memory_space<vmem>>, vector<16x32xf32>,
    %c0_i32_10 = arith.constant 0 : i32
    %13 = arith.cmpi eq, %arg1, %c0_i32_10 : i32
    %14 = arith.extui %13 : i1 to i32
    %c0_i32_11 = arith.constant 0 : i32
    %15 = arith.cmpi ne, %14, %c0_i32_11 : i32
    scf.if %15 {
      %c0_12 = arith.constant 0 : index
      %c0_13 = arith.constant 0 : index
      %16 = vector.load %arg4[%c0_12, %c0_13] : memref<16x1xf32, #tpu.memory_space<vmem>>, vector<16x1xf32>
      %cst_14 = arith.constant 0.000000e+00 : f32
      %17 = vector.broadcast %cst_14 : f32 to vector<16x1xf32>
      %18 = arith.subf %17, %16 : vector<16x1xf32>
      %c0_15 = arith.constant 0 : index
      %c0_16 = arith.constant 0 : index
      %19 = vector.load %arg11[%c0_15, %c0_16] : memref<16x32xf32, #tpu.memory_space<vmem>>, vector<16x32xf32>
      %20 = vector.broadcast %18 : vector<16x1xf32> to vector<16x32xf32>
      %21 = arith.mulf %20, %19 : vector<16x32xf32>
      %c0_17 = arith.constant 0 : index
      %c0_18 = arith.constant 0 : index
      %22 = vector.load %arg6[%c0_17, %c0_18] : memref<16x32xf32, #tpu.memory_space<vmem>>, vector<16x32xf32>
      %23 = arith.truncf %22 : vector<16x32xf32> to vector<16x32xbf16>
      %c0_19 = arith.constant 0 : index
      %c0_20 = arith.constant 0 : index
      %24 = vector.load %arg7[%c0_19, %c0_20] : memref<32x128xbf16, #tpu.memory_space<vmem>>, vector<32x128xbf16>
      %cst_21 = arith.constant dense<0.000000e+00> : vector<16x128xf32>
      %25 = tpu.matmul %23, %24, %cst_21 {dimension_numbers = #tpu.dot_dimension_numbers<[1], [0], [0], [1], [0, 0, 1, 1], [], []>} : vector<16x32xbf16>, vector<32x128xbf16>, vector<16x128xf32> -> vector<16x128xf32>
      %26 = arith.truncf %21 : vector<16x32xf32> to vector<16x32xbf16>
      %c0_22 = arith.constant 0 : index
      %c0_23 = arith.constant 0 : index
      %27 = vector.load %arg8[%c0_22, %c0_23] : memref<32x128xbf16, #tpu.memory_space<vmem>>, vector<32x128xbf16>
      %cst_24 = arith.constant dense<0.000000e+00> : vector<16x128xf32>
      %28 = tpu.matmul %26, %27, %cst_24 {dimension_numbers = #tpu.dot_dimension_numbers<[1], [0], [0], [1], [0, 0, 1, 1], [], []>} : vector<16x32xbf16>, vector<32x128xbf16>, vector<16x128xf32> -> vector<16x128xf32>
      %29 = arith.addf %25, %28 : vector<16x128xf32>
      %c0_25 = arith.constant 0 : index
      %c0_26 = arith.constant 0 : index
      %30 = vector.load %arg9[%c0_25, %c0_26] : memref<1x128xf32, #tpu.memory_space<vmem>>, vector<1x128xf32>
      %31 = vector.broadcast %30 : vector<1x128xf32> to vector<16x128xf32>
      %32 = arith.addf %29, %31 : vector<16x128xf32>
      %cst_27 = arith.constant 0.000000e+00 : f32
      %33 = vector.broadcast %cst_27 : f32 to vector<16x128xf32>
      %34 = arith.maximumf %32, %33 : vector<16x128xf32>
      %c0_28 = arith.constant 0 : index
      %c0_29 = arith.constant 0 : index
      %35 = vector.load %arg10[%c0_28, %c0_29] : memref<16x128xf32, #tpu.memory_space<vmem>>, vector<16x128xf32>
      tpu.vector_store %arg10[%c0_28, %c0_29], %34 {strides = array<i32>} : memref<16x128xf32, #tpu.memory_space<vmem>>, vector<16x128xf32>,
    } else {
    }
    return
  }
  func.func @transform_0(%arg0: i32, %arg1: i32) -> (i32, i32) {
    %c0_i32 = arith.constant 0 : i32
    return %arg0, %arg1 : i32, i32
  }
  func.func @transform_1(%arg0: i32, %arg1: i32) -> (i32, i32) {
    %c0_i32 = arith.constant 0 : i32
    %c0_i32_0 = arith.constant 0 : i32
    return %arg1, %c0_i32 : i32, i32
  }
  func.func @transform_2(%arg0: i32, %arg1: i32) -> (i32, i32) {
    %c0_i32 = arith.constant 0 : i32
    %c0_i32_0 = arith.constant 0 : i32
    return %arg0, %c0_i32 : i32, i32
  }
  func.func @transform_3(%arg0: i32, %arg1: i32) -> (i32, i32) {
    %c0_i32 = arith.constant 0 : i32
    %c0_i32_0 = arith.constant 0 : i32
    return %arg1, %c0_i32 : i32, i32
  }
  func.func @transform_4(%arg0: i32, %arg1: i32) -> (i32, i32) {
    %c0_i32 = arith.constant 0 : i32
    %c0_i32_0 = arith.constant 0 : i32
    return %arg0, %c0_i32 : i32, i32
  }
  func.func @transform_5(%arg0: i32, %arg1: i32) -> (i32, i32) {
    %c0_i32 = arith.constant 0 : i32
    %c0_i32_0 = arith.constant 0 : i32
    %c0_i32_1 = arith.constant 0 : i32
    return %c0_i32, %c0_i32_0 : i32, i32
  }
  func.func @transform_6(%arg0: i32, %arg1: i32) -> (i32, i32) {
    %c0_i32 = arith.constant 0 : i32
    %c0_i32_0 = arith.constant 0 : i32
    %c0_i32_1 = arith.constant 0 : i32
    return %c0_i32, %c0_i32_0 : i32, i32
  }
  func.func @transform_7(%arg0: i32, %arg1: i32) -> (i32, i32) {
    %c0_i32 = arith.constant 0 : i32
    %c0_i32_0 = arith.constant 0 : i32
    %c0_i32_1 = arith.constant 0 : i32
    return %c0_i32, %c0_i32_0 : i32, i32
  }
  func.func @transform_8(%arg0: i32, %arg1: i32) -> (i32, i32) {
    %c0_i32 = arith.constant 0 : i32
    %c0_i32_0 = arith.constant 0 : i32
    return %arg0, %c0_i32 : i32, i32
  }
}

</mosaic_0001>

<bundles_post_ra>
// kernel: tpu_custom_call.1
= control target key start
LH: loop header
LB: loop body
LE: loop exit
PB: predicated region body
PF: predicated region fallthrough
CT: control target
= control target key end

     0   :  { %13 = vsyncpa [#allocation4], 0  ;;  %s578_s0 = inlined_call_operand.hbm [shape: bf16[16,16], index: 0, kind: input, shape index: {}]   ;;  %s579_s1 = inlined_call_operand.vmem [shape: f32[16,1], index: 1, kind: input, shape index: {}]   ;;  %s580_s2 = inlined_call_operand.vmem [shape: f32[16,1], index: 2, kind: input, shape index: {}]   ;;  %s581_s3 = inlined_call_operand.vmem [shape: f32[16,32], index: 3, kind: input, shape index: {}]   ;;  %s582_s4 = inlined_call_operand.vmem [shape: f32[16,32], index: 4, kind: input, shape index: {}]   ;;  %s583_s5 = inlined_call_operand.hbm [shape: bf16[32,128], index: 5, kind: input, shape index: {}]   ;;  %s584_s6 = inlined_call_operand.hbm [shape: bf16[32,128], index: 6, kind: input, shape index: {}]   ;;  %s585_s7 = inlined_call_operand.vmem [shape: f32[1,128], index: 7, kind: input, shape index: {}]   ;;  %s586_s8 = inlined_call_operand.hbm [shape: f32[16,128], index: 8, kind: output, shape index: {}]  }
   0x1   :  { %14 = vsyncpa [#allocation7], 0 }
   0x2   :  { %15 = vsyncpa [#allocation5], 0  ;;  %s474_s27 = smov [#allocation6]   ;;  %s475_s29 = smov [#allocation3]  }
   0x3   :  { %s41_s28 = sshll.u32 %s474_s27, 4  ;;  %s21_s30 = sshll.u32 %s475_s29, 4  ;;  %s42_s28 = int_to_ptr.vmem [resolvable:$true] %s41_s28  ;;  %s22_s30 = int_to_ptr.vmem [resolvable:$true] %s21_s30 }
   0x4   :  { %s396_s9 = scalar_lea.vmem %s42_s28, 256  ;;  %p401_p1 = scmp.lt.s32.totalorder %s42_s28, %s42_s28 }
   0x5   :  { %p397_p0 = scmp.ne.s32.totalorder %s42_s28, %s396_s9  ;;  %p402_p2 = scmp.lt.s32.totalorder %s396_s9, %s396_s9 }
   0x7   :  { %p403_p3 = por %p402_p2, %p401_p1 }
   0x9   :  { %p404_p4 = pnand %p403_p3, %p397_p0 }
   0xb   :  { %407 = shalt.err (!%p404_p4)
}
   0xc   :  { %s476_s10 = smov 64   ;;  %s477_s11 = smov 4  }
   0xd   :  { %47 = dma.hbm_to_vmem [thread:$0]  %s583_s5, 256, %s42_s28, [#allocation7], %s476_s10, %s476_s10, %s477_s11  }
   0xe   :  { %s416_s14 = scalar_lea.vmem %s22_s30, 128  ;;  %p421_p6 = scmp.lt.s32.totalorder %s22_s30, %s22_s30 }
   0xf   :  { %p417_p5 = scmp.ne.s32.totalorder %s22_s30, %s416_s14  ;;  %p422_p7 = scmp.lt.s32.totalorder %s416_s14, %s416_s14 }
  0x11   :  { %p423_p8 = por %p422_p7, %p421_p6 }
  0x13   :  { %p424_p9 = pnand %p423_p8, %p417_p5 }
  0x15   :  { %427 = shalt.err (!%p424_p9)
}
  0x16   :  { %27 = dma.hbm_to_vmem [thread:$0]  %s578_s0, 128, %s22_s30, [#allocation4], %s476_s10, %s476_s10, %s477_s11  }
  0x17   :  { %s478_s17 = smov [#allocation8]  }
  0x18   :  { %s53_s18 = sshll.u32 %s478_s17, 4  ;;  %s54_s18 = int_to_ptr.vmem [resolvable:$true] %s53_s18 }
  0x19   :  { %s436_s19 = scalar_lea.vmem %s54_s18, 256  ;;  %p441_p11 = scmp.lt.s32.totalorder %s54_s18, %s54_s18 }
  0x1a   :  { %p437_p10 = scmp.ne.s32.totalorder %s54_s18, %s436_s19  ;;  %p442_p12 = scmp.lt.s32.totalorder %s436_s19, %s436_s19 }
  0x1c   :  { %p443_p13 = por %p442_p12, %p441_p11 }
  0x1e   :  { %p444_p0 = pnand %p443_p13, %p437_p10 }
  0x20   :  { %447 = shalt.err (!%p444_p0)
}
  0x21   :  { %59 = dma.hbm_to_vmem [thread:$0]  %s584_s6, 256, %s54_s18, [#allocation7], %s476_s10, %s476_s10, %s477_s11  }
  0x22   :  { %468 = dma.done.wait [#allocation4], 128  }
  0x23   :  { %469 = vsyncadd [#allocation4], 4294967168 }
  0x24   :  { %470 = dma.done.wait [#allocation7], 512  }
  0x25   :  { %471 = vsyncadd [#allocation7], 4294966784  ;;  %v479_v0 = vmov 0   ;;  %v79_v1 = vld [vmem:[%s579_s1] sm:$0xff]  ;;  %v80_v2 = vld [vmem:[%s579_s1 + $0x8] sm:$0xff]  ;;  %v480_v3 = vmov 0.0  }
  0x26   :  { %381 = vset.pattern.permute.xlu0 %v479_v0  ;;  %382 = vset.pattern.permute.xlu1 %v479_v0  ;;  %vm481_vm0 = vmmov 0   ;;  %v158_v4 = vld [vmem:[%s580_s2] sm:$0xff]  ;;  %v159_v5 = vld [vmem:[%s580_s2 + $0x8] sm:$0xff]  ;;  %vm76_vm1 = vcmask 261120   ;;  %v383_v15 = vld [vmem:[#allocation3] sm:$0xff]   ;;  %vm105_vm2 = vcmask 130048  }
  0x27   :  { %85 = vperm.xlu0 %381, %v79_v1   ;;  %348 = vmatprep.subr.bf16.mxu0 %v480_v3  ;;  %v160_v6 = vsub.f32 0.0, %v158_v4  ;;  %77 = vst.msk [vmem:[#allocation2] sm:$0xff] %vm76_vm1, %v480_v3  ;;  %78 = vst.msk [vmem:[#allocation2 + $0x8] sm:$0xff] %vm76_vm1, %v480_v3  ;;  %v161_v7 = vsub.f32 0.0, %v159_v5  ;;  %v81_v9 = vld [vmem:[%s581_s3] sm:$0xff]  ;;  %v82_v10 = vld [vmem:[%s581_s3 + $0x8] sm:$0xff] }
  0x28   :  { %354 = vmatprep.subr.bf16.mxu1 %v480_v3  ;;  %350 = vmatprep.mubr.msk.bf16.mxu0 %vm481_vm0, %v480_v3  ;;  %v384_v16 = vld [vmem:[#allocation6 + $0x8] sm:$0xff]   ;;  %v385_v17 = vld [vmem:[#allocation6] sm:$0xff]   ;;  %v386_v18 = vld [vmem:[#allocation8 + $0x8] sm:$0xff]   ;;  %s482_s11 = smov [#allocation9]  }
  0x29   :  { %358 = vmatprep.mubr.msk.bf16.mxu1 %vm481_vm0, %v480_v3  ;;  %166 = vperm.xlu1 %382, %v160_v6   ;;  %v176_v19 = vld [vmem:[%s582_s4] sm:$0xff]  ;;  %v177_v20 = vld [vmem:[%s582_s4 + $0x8] sm:$0xff]  ;;  %s318_s12 = sshll.u32 %s482_s11, 4  ;;  %s319_s12 = int_to_ptr.vmem [resolvable:$true] %s318_s12 }
  0x2a   :  { %v178_v21 = vpack.c.bf16 %v177_v20, %v176_v19  ;;  %355 = vmatpush3.bf16.msra.mxu1 %v386_v18  ;;  %v387_v22 = vld [vmem:[#allocation8] sm:$0xff]   ;;  %v339_v43 = vld [vmem:[%s585_s7] ss:$0 sm:$0xff]  ;;  %s448_s13 = scalar_lea.vmem %s319_s12, 256  ;;  %p453_p2 = scmp.lt.s32.totalorder %s319_s12, %s319_s12 }
  0x2b   :  { %90 = vperm.xlu0 %381, %v80_v2   ;;  %356 = vmatprep.subr.bf16.mxu1 %v480_v3  ;;  %p449_p1 = scmp.ne.s32.totalorder %s319_s12, %s448_s13  ;;  %p454_p3 = scmp.lt.s32.totalorder %s448_s13, %s448_s13 }
  0x2d   :  { %171 = vperm.xlu1 %382, %v161_v7   ;;  %p455_p4 = por %p454_p3, %p453_p2 }
  0x2e   :  { %357 = vmatpush3.bf16.msra.mxu1 %v387_v22  ;;  %v96_v23 = vld [vmem:[#allocation2] sm:$0xff]  ;;  %v97_v27 = vld [vmem:[#allocation2 + $0x8] sm:$0xff] }
  0x2f   :  { %p456_p5 = pnand %p455_p4, %p449_p1 }
  0xa2   :  { %v86_v8 = vpop.permute.xlu0 %85 }
  0xa3   :  { %v93_v12 = vmul.f32 %v86_v8, %v81_v9 }
  0xa4   :  { %v167_v31 = vpop.permute.xlu1 %166 }
  0xa6   :  { %v91_v11 = vpop.permute.xlu0 %90 }
  0xa7   :  { %v94_v13 = vmul.f32 %v91_v11, %v82_v10 }
  0xa8   :  { %v172_v33 = vpop.permute.xlu1 %171 }
  0xa9   :  { %v95_v14 = vpack.c.bf16 %v94_v13, %v93_v12 }
  0xab   :  { %349 = vmatpush3.bf16.msra.mxu0 %v95_v14 }
  0xac   :  { %362 = vmatprep.subr.bf16.mxu0 %v480_v3 }
  0xae   :  { %351 = vmatmul.mubr.msk.bf16.vlgmr.msra.gmra.mxu0 %vm105_vm2, %v383_v15 }
  0xaf   :  { %366 = vmatprep.mubr.msk.bf16.mxu0 %vm481_vm0, %v480_v3  ;;  %363 = vmatpush3.bf16.msra.mxu0 %v384_v16 }
  0xb0   :  { %364 = vmatprep.subr.bf16.mxu0 %v480_v3 }
  0xb3   :  { %365 = vmatpush3.bf16.msra.mxu0 %v385_v17 }
  0xb6   :  { %367 = vmatmul.mubr.msk.bf16.vlgmr.msra.gmra.mxu0 %vm76_vm1, %v178_v21 }
 0x16e   :  { %v143_v24 = vpop.f32.mrf.mxu0 }
 0x16f   :  { %v150_v25 = vadd.f32 %v143_v24, %v96_v23 }
 0x170   :  { %v352_v26 = vpop.f32.mrf.mxu0 }
 0x171   :  { %153 = vst.msk [vmem:[#allocation2] sm:$0xff] %vm76_vm1, %v150_v25 }
 0x172   :  { %v146_v28 = vpop.f32.mrf.mxu0 }
 0x173   :  { %v151_v29 = vadd.f32 %v146_v28, %v97_v27 }
 0x174   :  { %v353_v30 = vpop.f32.mrf.mxu0 }
 0x175   :  { %154 = vst.msk [vmem:[#allocation2 + $0x8] sm:$0xff] %vm76_vm1, %v151_v29 }
 0x176   :  { %v293_v38 = vpop.f32.mrf.mxu0 }
 0x178   :  { %v162_v32 = vld [vmem:[#allocation2] sm:$0xff]  ;;  %v368_v39 = vpop.f32.mrf.mxu0 }
 0x179   :  { %v174_v35 = vmul.f32 %v167_v31, %v162_v32 }
 0x17a   :  { %v296_v40 = vpop.f32.mrf.mxu0 }
 0x17c   :  { %v163_v34 = vld [vmem:[#allocation2 + $0x8] sm:$0xff]  ;;  %v369_v41 = vpop.f32.mrf.mxu0 }
 0x17d   :  { %v175_v36 = vmul.f32 %v172_v33, %v163_v34 }
 0x17f   :  { %v183_v37 = vpack.c.bf16 %v175_v36, %v174_v35 }
 0x181   :  { %359 = vmatmul.mubr.msk.bf16.vlgmr.msra.gmra.mxu1 %vm76_vm1, %v183_v37 }
 0x241   :  { %v237_v42 = vpop.f32.mrf.mxu1 }
 0x242   :  { %v294_v44 = vadd.f32 %v293_v38, %v237_v42 }
 0x243   :  { %v360_v45 = vpop.f32.mrf.mxu1 }
 0x244   :  { %v307_v46 = vadd.f32 %v339_v43, %v294_v44 }
 0x245   :  { %v240_v47 = vpop.f32.mrf.mxu1 }
 0x246   :  { %v309_v48 = vmax.f32 %v307_v46, 0.0  ;;  %v297_v49 = vadd.f32 %v296_v40, %v240_v47 }
 0x247   :  { %v361_v50 = vpop.f32.mrf.mxu1 }
 0x248   :  { %311 = vst [vmem:[#allocation9] sm:$0xff] %v309_v48  ;;  %v308_v51 = vadd.f32 %v339_v43, %v297_v49 }
 0x24a   :  { %v310_v52 = vmax.f32 %v308_v51, 0.0 }
 0x24c   :  { %312 = vst [vmem:[#allocation9 + $0x8] sm:$0xff] %v310_v52 }
 0x24d   :  { %459 = shalt.err (!%p456_p5)
}
 0x24e   :  { %s483_s7 = smov 128   ;;  %s484_s14 = smov 8  }
 0x24f   :  { %324 = dma.vmem_to_hbm [thread:$0]  %s319_s12, 256, %s586_s8, [#allocation5], %s483_s7, %s483_s7, %s484_s14  }
 0x250   :  { %472 = dma.done.wait [#allocation5], 256  }
 0x251   :  { %473 = vsyncadd [#allocation5], 4294967040 }
 0x252   :  { %328 = vsyncpa [#allocation4], 1 }
 0x253   :  { %329 = vsyncpa [#allocation7], 1 }
 0x254   :  { %330 = vsyncpa [#allocation5], 1 }

</bundles_post_ra>
